<compile_context>
chip_gen: v6e
topology: v6e:2x2x1
jax: 0.10.0
libtpu: 0.0.40
codegen_flags: <defaults>
</compile_context>

<pallas_src>
import functools

import jax
import jax.numpy as jnp
from jax.experimental import pallas as pl
from jax.experimental.pallas import tpu as pltpu


_PAD = 128  # lane-tile aligned zero border of the padded row scratch (>= W+1)


# ----------------------------------------------------------------------------
# Fused kernel: memory block + alpha blend + conv1/LeakyReLU + conv2 + residual
# ----------------------------------------------------------------------------
def _mem_res_fused_kernel(x_ref, g_ref, mn_ref, ma_ref, w1_ref, w2_ref,
                          colok_ref, *rest, h, w, use_translation):
    if use_translation:
        wt_ref, out_ref, xp_ref, x9_ref, mp_ref, m9_ref = rest
    else:
        wt_ref = None
        out_ref, xp_ref, x9_ref, mp_ref, m9_ref = rest

    n = h * w
    x_t = x_ref[0]                                   # (Cin, N) f32, lane-dense
    cin = x_t.shape[0]
    kdim = g_ref.shape[1]

    # ---- memory block: cosine scores + hard gumbel-softmax lookup ----------
    ssq = jnp.sum(x_t * x_t, axis=0, keepdims=True)                 # (1, N)
    xn = x_t * jax.lax.rsqrt(jnp.maximum(ssq, 1e-24))               # F.normalize(eps=1e-12)
    score = jnp.dot(mn_ref[...], xn.astype(jnp.bfloat16),           # (K, N)
                    preferred_element_type=jnp.float32)
    logits = score + g_ref[0]                                       # + Gumbel(0,1)
    # Hard gumbel-softmax forward value == one_hot(argmax(score + g)); tau > 0
    # only rescales before the softmax so it drops out of the hard/argmax path.
    maxv = jnp.max(logits, axis=0, keepdims=True)                   # (1, N)
    rows = jax.lax.broadcasted_iota(jnp.int32, (kdim, n), 0)
    idx = jnp.min(jnp.where(logits == maxv, rows, kdim), axis=0, keepdims=True)
    onehot = (rows == idx).astype(jnp.float32)                      # (K, N)
    mem_a = jnp.dot(ma_ref[...], onehot,                            # (Cin, N) = alpha*mem
                    preferred_element_type=jnp.float32)
    x2 = x_t + mem_a

    # ---- 3x3 conv (pad=1) as a single im2col matmul -------------------------
    def conv3x3(src, pad_ref, im2col_ref, w9_ref):
        csrc = pad_ref.shape[0]
        # Zero only the two 128-lane borders (row padding); interior is fully
        # overwritten below -- no whole-buffer clear per step.
        pad_ref[:, 0:_PAD] = jnp.zeros((csrc, _PAD), pad_ref.dtype)
        pad_ref[:, _PAD + n:] = jnp.zeros((csrc, _PAD), pad_ref.dtype)
        pad_ref[:, _PAD:_PAD + n] = src.astype(pad_ref.dtype)       # bf16, one cast
        for t in range(9):                     # 9 shifted taps -> (9*Csrc, N)
            di, dj = t // 3, t % 3
            start = _PAD + (di - 1) * w + (dj - 1)
            tap = pad_ref[:, start:start + n] * colok_ref[dj:dj + 1, :]
            im2col_ref[t * csrc:(t + 1) * csrc, :] = tap
        return jnp.dot(w9_ref[...], im2col_ref[...],                # (Cdst, N)
                       preferred_element_type=jnp.float32)

    acc1 = conv3x3(x2, xp_ref, x9_ref, w1_ref)
    mid = jnp.where(acc1 >= 0, acc1, jnp.float32(0.02) * acc1)      # LeakyReLU(0.02)
    acc2 = conv3x3(mid, mp_ref, m9_ref, w2_ref)

    # ---- residual: translation(identity) or plain identity ------------------
    if use_translation:
        acc2 = acc2 + jnp.dot(wt_ref[...], x_t.astype(jnp.bfloat16),
                              preferred_element_type=jnp.float32)
    else:
        acc2 = acc2 + x_t                       # translation=None -> identity add
    out_ref[0] = acc2.astype(out_ref.dtype)     # dense (Cout, N) store


# ----------------------------------------------------------------------------
# JAX wrapper
# ----------------------------------------------------------------------------
def mem_res_layer_forward(x_nchw, params, noise_key):
    """Eval-mode forward of _Mem_Res_layer (downsample=False, upsample=False)."""
    b, cin, h, w = x_nchw.shape
    n = h * w
    assert w + 1 <= _PAD
    # NCHW flattened: channel-on-sublane / pixel-on-lane -- no transposes.
    x = x_nchw.reshape(b, cin, n).astype(jnp.float32)

    m = params["mem_units"].astype(jnp.float32)                     # (K, Cin)
    kdim = m.shape[0]
    # Hoisted constants: normalized memory (bf16 for the score MXU matmul) and
    # alpha folded into the lookup table (x + alpha*mem == x + (alpha*m).T @ onehot).
    mn = m * jax.lax.rsqrt(jnp.maximum(jnp.sum(m * m, axis=1, keepdims=True), 1e-24))
    mn = mn.astype(jnp.bfloat16)                                    # (K, Cin)
    ma = (params["alpha"].reshape(()).astype(jnp.float32) * m).T    # (Cin, K) f32

    w1 = params["w1"].astype(jnp.float32)                           # (3, 3, Cin, Cmid)
    w2 = params["w2"].astype(jnp.float32)                           # (3, 3, Cmid, Cout)
    cmid, cout = w1.shape[-1], w2.shape[-1]
    # im2col weight slabs: row group t = 3*di + dj matches the kernel tap order.
    w1_9 = jnp.transpose(w1, (3, 0, 1, 2)).reshape(cmid, 9 * cin).astype(jnp.bfloat16)
    w2_9 = jnp.transpose(w2, (3, 0, 1, 2)).reshape(cout, 9 * cmid).astype(jnp.bfloat16)
    use_translation = "wt" in params

    # Width-boundary masks for the 3 horizontal taps (row boundaries are handled
    # by the zero lane borders of the padded scratch buffers).
    col = jnp.arange(n, dtype=jnp.int32) % w
    colok = jnp.stack([col >= 1, jnp.ones((n,), jnp.bool_), col <= w - 2])
    colok = colok.astype(jnp.bfloat16)                              # (3, N)

    # Gumbel(0,1) noise drawn outside the kernel (pltpu.prng_* has no
    # interpret-mode lowering; this also keeps the in-kernel EUP idle).
    g = jax.random.gumbel(noise_key, (b, kdim, n), jnp.float32)

    in_specs = [
        pl.BlockSpec((1, cin, n), lambda i: (i, 0, 0)),      # x: one image / step
        pl.BlockSpec((1, kdim, n), lambda i: (i, 0, 0)),     # gumbel noise
        pl.BlockSpec((kdim, cin), lambda i: (0, 0)),         # normalized memory
        pl.BlockSpec((cin, kdim), lambda i: (0, 0)),         # (alpha * memory)^T
        pl.BlockSpec((cmid, 9 * cin), lambda i: (0, 0)),     # conv1 im2col weights
        pl.BlockSpec((cout, 9 * cmid), lambda i: (0, 0)),    # conv2 im2col weights
        pl.BlockSpec((3, n), lambda i: (0, 0)),              # width masks
    ]
    inputs = [x, g, mn, ma, w1_9, w2_9, colok]
    if use_translation:
        in_specs.append(pl.BlockSpec((cout, cin), lambda i: (0, 0)))
        inputs.append(params["wt"].astype(jnp.bfloat16))

    flops = 2 * b * n * (2 * kdim * cin + 9 * cin * cmid + 9 * cmid * cout
                         + (cin * cout if use_translation else 0))
    bytes_accessed = (4 * (b * cin * n + b * kdim * n + b * cout * n)
                      + 2 * (int(w1_9.size) + int(w2_9.size))
                      + 4 * (int(mn.size) + int(ma.size)))

    kernel = functools.partial(_mem_res_fused_kernel, h=h, w=w,
                               use_translation=use_translation)
    out = pl.pallas_call(
        kernel,
        out_shape=jax.ShapeDtypeStruct((b, cout, n), jnp.float32),
        grid_spec=pltpu.PrefetchScalarGridSpec(
            num_scalar_prefetch=0,
            grid=(b,),
            in_specs=in_specs,
            out_specs=pl.BlockSpec((1, cout, n), lambda i: (i, 0, 0)),
            scratch_shapes=[
                pltpu.VMEM((cin, n + 2 * _PAD), jnp.bfloat16),    # padded x2 rows
                pltpu.VMEM((9 * cin, n), jnp.bfloat16),           # conv1 im2col
                pltpu.VMEM((cmid, n + 2 * _PAD), jnp.bfloat16),   # padded mid rows
                pltpu.VMEM((9 * cmid, n), jnp.bfloat16),          # conv2 im2col
            ],
        ),
        compiler_params=pltpu.CompilerParams(
            dimension_semantics=("parallel",),
            vmem_limit_bytes=32 * 1024 * 1024),
        cost_estimate=pl.CostEstimate(flops=flops, transcendentals=b * n,
                                      bytes_accessed=bytes_accessed),
    )(*inputs)

    return out.reshape(b, cout, h, w)    # already NCHW order -- free reshape


def init_params(key, in_planes, out_planes, kdim, wide_width=True):
    middle = (in_planes if in_planes > out_planes else out_planes) if wide_width else out_planes
    k1, k2, k3, k4 = jax.random.split(key, 4)
    params = {
        # nn.Embedding(kdim, hdim).weight -> (K, Cin)
        "mem_units": jax.random.normal(k1, (kdim, in_planes), jnp.float32),
        # conv_1 weight: torch (Cmid, Cin, 3, 3) stored as (3, 3, Cin, Cmid)
        #   == torch_w.permute(2, 3, 1, 0)
        "w1": 0.1 * jax.random.normal(k2, (3, 3, in_planes, middle), jnp.float32),
        # conv_2 weight: torch (Cout, Cmid, 3, 3) stored as (3, 3, Cmid, Cout)
        "w2": 0.1 * jax.random.normal(k3, (3, 3, middle, out_planes), jnp.float32),
        # torch init is zeros(1); nonzero here so the memory path is exercised
        "alpha": jnp.array([0.5], jnp.float32),
    }
    if in_planes != out_planes:
        # translation 1x1 conv: torch (Cout, Cin, 1, 1) stored as (Cout, Cin)
        params["wt"] = 0.1 * jax.random.normal(k4, (out_planes, in_planes), jnp.float32)
    # else: translation=None -> identity residual handled in-kernel
    return params


if __name__ == "__main__":
    key = jax.random.PRNGKey(0)
    k_params, k_x, k_noise = jax.random.split(key, 3)

    B, CIN, COUT, KDIM, H, W = 2, 4, 8, 16, 16, 16
    params = init_params(k_params, CIN, COUT, KDIM)
    x = jax.random.normal(k_x, (B, CIN, H, W), jnp.float32)

    fwd = jax.jit(mem_res_layer_forward)
    out = jax.block_until_ready(fwd(x, params, k_noise))
    assert out.shape == (B, COUT, H, W), out.shape
    assert bool(jnp.all(jnp.isfinite(out)))
    print("KERNEL_OK")
</pallas_src>

<mosaic_0001>
module attributes {stable_mosaic.version = 11 : i64} {
  func.func @_mem_res_fused_kernel(%arg0: i32, %arg1: memref<1x4x256xf32, #tpu.memory_space<vmem>>, %arg2: memref<1x16x256xf32, #tpu.memory_space<vmem>>, %arg3: memref<16x4xbf16, #tpu.memory_space<vmem>>, %arg4: memref<4x16xf32, #tpu.memory_space<vmem>>, %arg5: memref<8x36xbf16, #tpu.memory_space<vmem>>, %arg6: memref<8x72xbf16, #tpu.memory_space<vmem>>, %arg7: memref<3x256xbf16, #tpu.memory_space<vmem>>, %arg8: memref<8x4xbf16, #tpu.memory_space<vmem>>, %arg9: memref<1x8x256xf32, #tpu.memory_space<vmem>>, %arg10: memref<4x512xbf16, #tpu.memory_space<vmem>>, %arg11: memref<36x256xbf16, #tpu.memory_space<vmem>>, %arg12: memref<8x512xbf16, #tpu.memory_space<vmem>>, %arg13: memref<72x256xbf16, #tpu.memory_space<vmem>>) attributes {dimension_semantics = [#tpu.dimension_semantics<parallel>], iteration_bounds = array<i64: 2>, scalar_prefetch = 0 : i64, scratch_operands = 4 : i64, tpu.core_type = #tpu.core_type<tc>, window_params = [{transform_indices = @transform_0, window_bounds = array<i64: 1, 4, 256>}, {transform_indices = @transform_1, window_bounds = array<i64: 1, 16, 256>}, {pipeline_mode = #tpu.pipeline_mode<synchronous>, transform_indices = @transform_2, window_bounds = array<i64: 16, 4>}, {pipeline_mode = #tpu.pipeline_mode<synchronous>, transform_indices = @transform_3, window_bounds = array<i64: 4, 16>}, {pipeline_mode = #tpu.pipeline_mode<synchronous>, transform_indices = @transform_4, window_bounds = array<i64: 8, 36>}, {pipeline_mode = #tpu.pipeline_mode<synchronous>, transform_indices = @transform_5, window_bounds = array<i64: 8, 72>}, {pipeline_mode = #tpu.pipeline_mode<synchronous>, transform_indices = @transform_6, window_bounds = array<i64: 3, 256>}, {pipeline_mode = #tpu.pipeline_mode<synchronous>, transform_indices = @transform_7, window_bounds = array<i64: 8, 4>}, {transform_indices = @transform_8, window_bounds = array<i64: 1, 8, 256>}]} {
    %c0 = arith.constant 0 : index
    %c0_0 = arith.constant 0 : index
    %c0_1 = arith.constant 0 : index
    %0 = vector.load %arg1[%c0, %c0_0, %c0_1] : memref<1x4x256xf32, #tpu.memory_space<vmem>>, vector<1x4x256xf32>
    %1 = vector.shape_cast %0 : vector<1x4x256xf32> to vector<4x256xf32>
    %2 = arith.mulf %1, %1 : vector<4x256xf32>
    %cst = arith.constant dense<0.000000e+00> : vector<256xf32>
    %3 = vector.multi_reduction <add>, %2, %cst [0] : vector<4x256xf32> to vector<256xf32>
    %4 = vector.shape_cast %3 : vector<256xf32> to vector<1x256xf32>
    %cst_2 = arith.constant 1.000000e-24 : f32
    %5 = vector.broadcast %cst_2 : f32 to vector<1x256xf32>
    %6 = arith.maximumf %4, %5 : vector<1x256xf32>
    %7 = math.rsqrt %6 : vector<1x256xf32>
    %8 = vector.broadcast %7 : vector<1x256xf32> to vector<4x256xf32>
    %9 = arith.mulf %1, %8 : vector<4x256xf32>
    %c0_3 = arith.constant 0 : index
    %c0_4 = arith.constant 0 : index
    %10 = vector.load %arg3[%c0_3, %c0_4] : memref<16x4xbf16, #tpu.memory_space<vmem>>, vector<16x4xbf16>
    %11 = arith.truncf %9 : vector<4x256xf32> to vector<4x256xbf16>
    %cst_5 = arith.constant dense<0.000000e+00> : vector<16x256xf32>
    %12 = tpu.matmul %10, %11, %cst_5 {dimension_numbers = #tpu.dot_dimension_numbers<[1], [0], [0], [1], [0, 0, 1, 1], [], []>} : vector<16x4xbf16>, vector<4x256xbf16>, vector<16x256xf32> -> vector<16x256xf32>
    %c0_6 = arith.constant 0 : index
    %c0_7 = arith.constant 0 : index
    %c0_8 = arith.constant 0 : index
    %13 = vector.load %arg2[%c0_6, %c0_7, %c0_8] : memref<1x16x256xf32, #tpu.memory_space<vmem>>, vector<1x16x256xf32>
    %14 = vector.shape_cast %13 : vector<1x16x256xf32> to vector<16x256xf32>
    %15 = arith.addf %12, %14 : vector<16x256xf32>
    %cst_9 = arith.constant dense<0xFF800000> : vector<256xf32>
    %16 = vector.multi_reduction <maximumf>, %15, %cst_9 [0] : vector<16x256xf32> to vector<256xf32>
    %17 = vector.shape_cast %16 : vector<256xf32> to vector<1x256xf32>
    %18 = tpu.iota {dimensions = array<i32: 0>} : vector<16x256xi32>
    %19 = vector.broadcast %17 : vector<1x256xf32> to vector<16x256xf32>
    %20 = arith.cmpf oeq, %15, %19 : vector<16x256xf32>
    %c16_i32 = arith.constant 16 : i32
    %21 = vector.broadcast %c16_i32 : i32 to vector<16x256xi32>
    %22 = arith.select %20, %18, %21 : vector<16x256xi1>, vector<16x256xi32>
    %cst_10 = arith.constant dense<2147483647> : vector<256xi32>
    %23 = vector.multi_reduction <minsi>, %22, %cst_10 [0] : vector<16x256xi32> to vector<256xi32>
    %24 = vector.shape_cast %23 : vector<256xi32> to vector<1x256xi32>
    %25 = vector.broadcast %24 : vector<1x256xi32> to vector<16x256xi32>
    %26 = arith.cmpi eq, %18, %25 : vector<16x256xi32>
    %27 = arith.extui %26 : vector<16x256xi1> to vector<16x256xi32>
    %28 = arith.sitofp %27 : vector<16x256xi32> to vector<16x256xf32>
    %c0_11 = arith.constant 0 : index
    %c0_12 = arith.constant 0 : index
    %29 = vector.load %arg4[%c0_11, %c0_12] : memref<4x16xf32, #tpu.memory_space<vmem>>, vector<4x16xf32>
    %cst_13 = arith.constant dense<0.000000e+00> : vector<4x256xf32>
    %30 = tpu.matmul %29, %28, %cst_13 {dimension_numbers = #tpu.dot_dimension_numbers<[1], [0], [0], [1], [0, 0, 1, 1], [], []>} : vector<4x16xf32>, vector<16x256xf32>, vector<4x256xf32> -> vector<4x256xf32>
    %31 = arith.addf %1, %30 : vector<4x256xf32>
    %cst_14 = arith.constant 0.000000e+00 : bf16
    %32 = vector.broadcast %cst_14 : bf16 to vector<4x128xbf16>
    %c0_15 = arith.constant 0 : index
    %c0_16 = arith.constant 0 : index
    %33 = vector.load %arg10[%c0_15, %c0_16] : memref<4x512xbf16, #tpu.memory_space<vmem>>, vector<4x128xbf16>
    tpu.vector_store %arg10[%c0_15, %c0_16], %32 {strides = array<i32>} : memref<4x512xbf16, #tpu.memory_space<vmem>>, vector<4x128xbf16>,
    %cst_17 = arith.constant 0.000000e+00 : bf16
    %34 = vector.broadcast %cst_17 : bf16 to vector<4x128xbf16>
    %c0_18 = arith.constant 0 : index
    %c384 = arith.constant 384 : index
    %35 = vector.load %arg10[%c0_18, %c384] : memref<4x512xbf16, #tpu.memory_space<vmem>>, vector<4x128xbf16>
    tpu.vector_store %arg10[%c0_18, %c384], %34 {strides = array<i32>} : memref<4x512xbf16, #tpu.memory_space<vmem>>, vector<4x128xbf16>,
    %36 = arith.truncf %31 : vector<4x256xf32> to vector<4x256xbf16>
    %c0_19 = arith.constant 0 : index
    %c128 = arith.constant 128 : index
    %37 = vector.load %arg10[%c0_19, %c128] : memref<4x512xbf16, #tpu.memory_space<vmem>>, vector<4x256xbf16>
    tpu.vector_store %arg10[%c0_19, %c128], %36 {strides = array<i32>} : memref<4x512xbf16, #tpu.memory_space<vmem>>, vector<4x256xbf16>,
    %c0_20 = arith.constant 0 : index
    %c111 = arith.constant 111 : index
    %38 = vector.load %arg10[%c0_20, %c111] : memref<4x512xbf16, #tpu.memory_space<vmem>>, vector<4x256xbf16>
    %c0_21 = arith.constant 0 : index
    %c0_22 = arith.constant 0 : index
    %39 = vector.load %arg7[%c0_21, %c0_22] : memref<3x256xbf16, #tpu.memory_space<vmem>>, vector<1x256xbf16>
    %40 = vector.broadcast %39 : vector<1x256xbf16> to vector<4x256xbf16>
    %41 = arith.mulf %38, %40 : vector<4x256xbf16>
    %c0_23 = arith.constant 0 : index
    %c0_24 = arith.constant 0 : index
    %42 = vector.load %arg11[%c0_23, %c0_24] : memref<36x256xbf16, #tpu.memory_space<vmem>>, vector<4x256xbf16>
    tpu.vector_store %arg11[%c0_23, %c0_24], %41 {strides = array<i32>} : memref<36x256xbf16, #tpu.memory_space<vmem>>, vector<4x256xbf16>,
    %c0_25 = arith.constant 0 : index
    %c112 = arith.constant 112 : index
    %43 = vector.load %arg10[%c0_25, %c112] : memref<4x512xbf16, #tpu.memory_space<vmem>>, vector<4x256xbf16>
    %c1 = arith.constant 1 : index
    %c0_26 = arith.constant 0 : index
    %44 = vector.load %arg7[%c1, %c0_26] : memref<3x256xbf16, #tpu.memory_space<vmem>>, vector<1x256xbf16>
    %45 = vector.broadcast %44 : vector<1x256xbf16> to vector<4x256xbf16>
    %46 = arith.mulf %43, %45 : vector<4x256xbf16>
    %c4 = arith.constant 4 : index
    %c0_27 = arith.constant 0 : index
    %47 = vector.load %arg11[%c4, %c0_27] : memref<36x256xbf16, #tpu.memory_space<vmem>>, vector<4x256xbf16>
    tpu.vector_store %arg11[%c4, %c0_27], %46 {strides = array<i32>} : memref<36x256xbf16, #tpu.memory_space<vmem>>, vector<4x256xbf16>,
    %c0_28 = arith.constant 0 : index
    %c113 = arith.constant 113 : index
    %48 = vector.load %arg10[%c0_28, %c113] : memref<4x512xbf16, #tpu.memory_space<vmem>>, vector<4x256xbf16>
    %c2 = arith.constant 2 : index
    %c0_29 = arith.constant 0 : index
    %49 = vector.load %arg7[%c2, %c0_29] : memref<3x256xbf16, #tpu.memory_space<vmem>>, vector<1x256xbf16>
    %50 = vector.broadcast %49 : vector<1x256xbf16> to vector<4x256xbf16>
    %51 = arith.mulf %48, %50 : vector<4x256xbf16>
    %c8 = arith.constant 8 : index
    %c0_30 = arith.constant 0 : index
    %52 = vector.load %arg11[%c8, %c0_30] : memref<36x256xbf16, #tpu.memory_space<vmem>>, vector<4x256xbf16>
    tpu.vector_store %arg11[%c8, %c0_30], %51 {strides = array<i32>} : memref<36x256xbf16, #tpu.memory_space<vmem>>, vector<4x256xbf16>,
    %c0_31 = arith.constant 0 : index
    %c127 = arith.constant 127 : index
    %53 = vector.load %arg10[%c0_31, %c127] : memref<4x512xbf16, #tpu.memory_space<vmem>>, vector<4x256xbf16>
    %c0_32 = arith.constant 0 : index
    %c0_33 = arith.constant 0 : index
    %54 = vector.load %arg7[%c0_32, %c0_33] : memref<3x256xbf16, #tpu.memory_space<vmem>>, vector<1x256xbf16>
    %55 = vector.broadcast %54 : vector<1x256xbf16> to vector<4x256xbf16>
    %56 = arith.mulf %53, %55 : vector<4x256xbf16>
    %c12 = arith.constant 12 : index
    %c0_34 = arith.constant 0 : index
    %57 = vector.load %arg11[%c12, %c0_34] : memref<36x256xbf16, #tpu.memory_space<vmem>>, vector<4x256xbf16>
    tpu.vector_store %arg11[%c12, %c0_34], %56 {strides = array<i32>} : memref<36x256xbf16, #tpu.memory_space<vmem>>, vector<4x256xbf16>,
    %c0_35 = arith.constant 0 : index
    %c128_36 = arith.constant 128 : index
    %58 = vector.load %arg10[%c0_35, %c128_36] : memref<4x512xbf16, #tpu.memory_space<vmem>>, vector<4x256xbf16>
    %c1_37 = arith.constant 1 : index
    %c0_38 = arith.constant 0 : index
    %59 = vector.load %arg7[%c1_37, %c0_38] : memref<3x256xbf16, #tpu.memory_space<vmem>>, vector<1x256xbf16>
    %60 = vector.broadcast %59 : vector<1x256xbf16> to vector<4x256xbf16>
    %61 = arith.mulf %58, %60 : vector<4x256xbf16>
    %c16 = arith.constant 16 : index
    %c0_39 = arith.constant 0 : index
    %62 = vector.load %arg11[%c16, %c0_39] : memref<36x256xbf16, #tpu.memory_space<vmem>>, vector<4x256xbf16>
    tpu.vector_store %arg11[%c16, %c0_39], %61 {strides = array<i32>} : memref<36x256xbf16, #tpu.memory_space<vmem>>, vector<4x256xbf16>,
    %c0_40 = arith.constant 0 : index
    %c129 = arith.constant 129 : index
    %63 = vector.load %arg10[%c0_40, %c129] : memref<4x512xbf16, #tpu.memory_space<vmem>>, vector<4x256xbf16>
    %c2_41 = arith.constant 2 : index
    %c0_42 = arith.constant 0 : index
    %64 = vector.load %arg7[%c2_41, %c0_42] : memref<3x256xbf16, #tpu.memory_space<vmem>>, vector<1x256xbf16>
    %65 = vector.broadcast %64 : vector<1x256xbf16> to vector<4x256xbf16>
    %66 = arith.mulf %63, %65 : vector<4x256xbf16>
    %c20 = arith.constant 20 : index
    %c0_43 = arith.constant 0 : index
    %67 = vector.load %arg11[%c20, %c0_43] : memref<36x256xbf16, #tpu.memory_space<vmem>>, vector<4x256xbf16>
    tpu.vector_store %arg11[%c20, %c0_43], %66 {strides = array<i32>} : memref<36x256xbf16, #tpu.memory_space<vmem>>, vector<4x256xbf16>,
    %c0_44 = arith.constant 0 : index
    %c143 = arith.constant 143 : index
    %68 = vector.load %arg10[%c0_44, %c143] : memref<4x512xbf16, #tpu.memory_space<vmem>>, vector<4x256xbf16>
    %c0_45 = arith.constant 0 : index
    %c0_46 = arith.constant 0 : index
    %69 = vector.load %arg7[%c0_45, %c0_46] : memref<3x256xbf16, #tpu.memory_space<vmem>>, vector<1x256xbf16>
    %70 = vector.broadcast %69 : vector<1x256xbf16> to vector<4x256xbf16>
    %71 = arith.mulf %68, %70 : vector<4x256xbf16>
    %c24 = arith.constant 24 : index
    %c0_47 = arith.constant 0 : index
    %72 = vector.load %arg11[%c24, %c0_47] : memref<36x256xbf16, #tpu.memory_space<vmem>>, vector<4x256xbf16>
    tpu.vector_store %arg11[%c24, %c0_47], %71 {strides = array<i32>} : memref<36x256xbf16, #tpu.memory_space<vmem>>, vector<4x256xbf16>,
    %c0_48 = arith.constant 0 : index
    %c144 = arith.constant 144 : index
    %73 = vector.load %arg10[%c0_48, %c144] : memref<4x512xbf16, #tpu.memory_space<vmem>>, vector<4x256xbf16>
    %c1_49 = arith.constant 1 : index
    %c0_50 = arith.constant 0 : index
    %74 = vector.load %arg7[%c1_49, %c0_50] : memref<3x256xbf16, #tpu.memory_space<vmem>>, vector<1x256xbf16>
    %75 = vector.broadcast %74 : vector<1x256xbf16> to vector<4x256xbf16>
    %76 = arith.mulf %73, %75 : vector<4x256xbf16>
    %c28 = arith.constant 28 : index
    %c0_51 = arith.constant 0 : index
    %77 = vector.load %arg11[%c28, %c0_51] : memref<36x256xbf16, #tpu.memory_space<vmem>>, vector<4x256xbf16>
    tpu.vector_store %arg11[%c28, %c0_51], %76 {strides = array<i32>} : memref<36x256xbf16, #tpu.memory_space<vmem>>, vector<4x256xbf16>,
    %c0_52 = arith.constant 0 : index
    %c145 = arith.constant 145 : index
    %78 = vector.load %arg10[%c0_52, %c145] : memref<4x512xbf16, #tpu.memory_space<vmem>>, vector<4x256xbf16>
    %c2_53 = arith.constant 2 : index
    %c0_54 = arith.constant 0 : index
    %79 = vector.load %arg7[%c2_53, %c0_54] : memref<3x256xbf16, #tpu.memory_space<vmem>>, vector<1x256xbf16>
    %80 = vector.broadcast %79 : vector<1x256xbf16> to vector<4x256xbf16>
    %81 = arith.mulf %78, %80 : vector<4x256xbf16>
    %c32 = arith.constant 32 : index
    %c0_55 = arith.constant 0 : index
    %82 = vector.load %arg11[%c32, %c0_55] : memref<36x256xbf16, #tpu.memory_space<vmem>>, vector<4x256xbf16>
    tpu.vector_store %arg11[%c32, %c0_55], %81 {strides = array<i32>} : memref<36x256xbf16, #tpu.memory_space<vmem>>, vector<4x256xbf16>,
    %c0_56 = arith.constant 0 : index
    %c0_57 = arith.constant 0 : index
    %83 = vector.load %arg5[%c0_56, %c0_57] : memref<8x36xbf16, #tpu.memory_space<vmem>>, vector<8x36xbf16>
    %c0_58 = arith.constant 0 : index
    %c0_59 = arith.constant 0 : index
    %84 = vector.load %arg11[%c0_58, %c0_59] : memref<36x256xbf16, #tpu.memory_space<vmem>>, vector<36x256xbf16>
    %cst_60 = arith.constant dense<0.000000e+00> : vector<8x256xf32>
    %85 = tpu.matmul %83, %84, %cst_60 {dimension_numbers = #tpu.dot_dimension_numbers<[1], [0], [0], [1], [0, 0, 1, 1], [], []>} : vector<8x36xbf16>, vector<36x256xbf16>, vector<8x256xf32> -> vector<8x256xf32>
    %cst_61 = arith.constant 0.000000e+00 : f32
    %86 = vector.broadcast %cst_61 : f32 to vector<8x256xf32>
    %87 = arith.cmpf oge, %85, %86 : vector<8x256xf32>
    %cst_62 = arith.constant 2.000000e-02 : f32
    %88 = vector.broadcast %cst_62 : f32 to vector<8x256xf32>
    %89 = arith.mulf %88, %85 : vector<8x256xf32>
    %90 = arith.select %87, %85, %89 : vector<8x256xi1>, vector<8x256xf32>
    %cst_63 = arith.constant 0.000000e+00 : bf16
    %91 = vector.broadcast %cst_63 : bf16 to vector<8x128xbf16>
    %c0_64 = arith.constant 0 : index
    %c0_65 = arith.constant 0 : index
    %92 = vector.load %arg12[%c0_64, %c0_65] : memref<8x512xbf16, #tpu.memory_space<vmem>>, vector<8x128xbf16>
    tpu.vector_store %arg12[%c0_64, %c0_65], %91 {strides = array<i32>} : memref<8x512xbf16, #tpu.memory_space<vmem>>, vector<8x128xbf16>,
    %cst_66 = arith.constant 0.000000e+00 : bf16
    %93 = vector.broadcast %cst_66 : bf16 to vector<8x128xbf16>
    %c0_67 = arith.constant 0 : index
    %c384_68 = arith.constant 384 : index
    %94 = vector.load %arg12[%c0_67, %c384_68] : memref<8x512xbf16, #tpu.memory_space<vmem>>, vector<8x128xbf16>
    tpu.vector_store %arg12[%c0_67, %c384_68], %93 {strides = array<i32>} : memref<8x512xbf16, #tpu.memory_space<vmem>>, vector<8x128xbf16>,
    %95 = arith.truncf %90 : vector<8x256xf32> to vector<8x256xbf16>
    %c0_69 = arith.constant 0 : index
    %c128_70 = arith.constant 128 : index
    %96 = vector.load %arg12[%c0_69, %c128_70] : memref<8x512xbf16, #tpu.memory_space<vmem>>, vector<8x256xbf16>
    tpu.vector_store %arg12[%c0_69, %c128_70], %95 {strides = array<i32>} : memref<8x512xbf16, #tpu.memory_space<vmem>>, vector<8x256xbf16>,
    %c0_71 = arith.constant 0 : index
    %c111_72 = arith.constant 111 : index
    %97 = vector.load %arg12[%c0_71, %c111_72] : memref<8x512xbf16, #tpu.memory_space<vmem>>, vector<8x256xbf16>
    %c0_73 = arith.constant 0 : index
    %c0_74 = arith.constant 0 : index
    %98 = vector.load %arg7[%c0_73, %c0_74] : memref<3x256xbf16, #tpu.memory_space<vmem>>, vector<1x256xbf16>
    %99 = vector.broadcast %98 : vector<1x256xbf16> to vector<8x256xbf16>
    %100 = arith.mulf %97, %99 : vector<8x256xbf16>
    %c0_75 = arith.constant 0 : index
    %c0_76 = arith.constant 0 : index
    %101 = vector.load %arg13[%c0_75, %c0_76] : memref<72x256xbf16, #tpu.memory_space<vmem>>, vector<8x256xbf16>
    tpu.vector_store %arg13[%c0_75, %c0_76], %100 {strides = array<i32>} : memref<72x256xbf16, #tpu.memory_space<vmem>>, vector<8x256xbf16>,
    %c0_77 = arith.constant 0 : index
    %c112_78 = arith.constant 112 : index
    %102 = vector.load %arg12[%c0_77, %c112_78] : memref<8x512xbf16, #tpu.memory_space<vmem>>, vector<8x256xbf16>
    %c1_79 = arith.constant 1 : index
    %c0_80 = arith.constant 0 : index
    %103 = vector.load %arg7[%c1_79, %c0_80] : memref<3x256xbf16, #tpu.memory_space<vmem>>, vector<1x256xbf16>
    %104 = vector.broadcast %103 : vector<1x256xbf16> to vector<8x256xbf16>
    %105 = arith.mulf %102, %104 : vector<8x256xbf16>
    %c8_81 = arith.constant 8 : index
    %c0_82 = arith.constant 0 : index
    %106 = vector.load %arg13[%c8_81, %c0_82] : memref<72x256xbf16, #tpu.memory_space<vmem>>, vector<8x256xbf16>
    tpu.vector_store %arg13[%c8_81, %c0_82], %105 {strides = array<i32>} : memref<72x256xbf16, #tpu.memory_space<vmem>>, vector<8x256xbf16>,
    %c0_83 = arith.constant 0 : index
    %c113_84 = arith.constant 113 : index
    %107 = vector.load %arg12[%c0_83, %c113_84] : memref<8x512xbf16, #tpu.memory_space<vmem>>, vector<8x256xbf16>
    %c2_85 = arith.constant 2 : index
    %c0_86 = arith.constant 0 : index
    %108 = vector.load %arg7[%c2_85, %c0_86] : memref<3x256xbf16, #tpu.memory_space<vmem>>, vector<1x256xbf16>
    %109 = vector.broadcast %108 : vector<1x256xbf16> to vector<8x256xbf16>
    %110 = arith.mulf %107, %109 : vector<8x256xbf16>
    %c16_87 = arith.constant 16 : index
    %c0_88 = arith.constant 0 : index
    %111 = vector.load %arg13[%c16_87, %c0_88] : memref<72x256xbf16, #tpu.memory_space<vmem>>, vector<8x256xbf16>
    tpu.vector_store %arg13[%c16_87, %c0_88], %110 {strides = array<i32>} : memref<72x256xbf16, #tpu.memory_space<vmem>>, vector<8x256xbf16>,
    %c0_89 = arith.constant 0 : index
    %c127_90 = arith.constant 127 : index
    %112 = vector.load %arg12[%c0_89, %c127_90] : memref<8x512xbf16, #tpu.memory_space<vmem>>, vector<8x256xbf16>
    %c0_91 = arith.constant 0 : index
    %c0_92 = arith.constant 0 : index
    %113 = vector.load %arg7[%c0_91, %c0_92] : memref<3x256xbf16, #tpu.memory_space<vmem>>, vector<1x256xbf16>
    %114 = vector.broadcast %113 : vector<1x256xbf16> to vector<8x256xbf16>
    %115 = arith.mulf %112, %114 : vector<8x256xbf16>
    %c24_93 = arith.constant 24 : index
    %c0_94 = arith.constant 0 : index
    %116 = vector.load %arg13[%c24_93, %c0_94] : memref<72x256xbf16, #tpu.memory_space<vmem>>, vector<8x256xbf16>
    tpu.vector_store %arg13[%c24_93, %c0_94], %115 {strides = array<i32>} : memref<72x256xbf16, #tpu.memory_space<vmem>>, vector<8x256xbf16>,
    %c0_95 = arith.constant 0 : index
    %c128_96 = arith.constant 128 : index
    %117 = vector.load %arg12[%c0_95, %c128_96] : memref<8x512xbf16, #tpu.memory_space<vmem>>, vector<8x256xbf16>
    %c1_97 = arith.constant 1 : index
    %c0_98 = arith.constant 0 : index
    %118 = vector.load %arg7[%c1_97, %c0_98] : memref<3x256xbf16, #tpu.memory_space<vmem>>, vector<1x256xbf16>
    %119 = vector.broadcast %118 : vector<1x256xbf16> to vector<8x256xbf16>
    %120 = arith.mulf %117, %119 : vector<8x256xbf16>
    %c32_99 = arith.constant 32 : index
    %c0_100 = arith.constant 0 : index
    %121 = vector.load %arg13[%c32_99, %c0_100] : memref<72x256xbf16, #tpu.memory_space<vmem>>, vector<8x256xbf16>
    tpu.vector_store %arg13[%c32_99, %c0_100], %120 {strides = array<i32>} : memref<72x256xbf16, #tpu.memory_space<vmem>>, vector<8x256xbf16>,
    %c0_101 = arith.constant 0 : index
    %c129_102 = arith.constant 129 : index
    %122 = vector.load %arg12[%c0_101, %c129_102] : memref<8x512xbf16, #tpu.memory_space<vmem>>, vector<8x256xbf16>
    %c2_103 = arith.constant 2 : index
    %c0_104 = arith.constant 0 : index
    %123 = vector.load %arg7[%c2_103, %c0_104] : memref<3x256xbf16, #tpu.memory_space<vmem>>, vector<1x256xbf16>
    %124 = vector.broadcast %123 : vector<1x256xbf16> to vector<8x256xbf16>
    %125 = arith.mulf %122, %124 : vector<8x256xbf16>
    %c40 = arith.constant 40 : index
    %c0_105 = arith.constant 0 : index
    %126 = vector.load %arg13[%c40, %c0_105] : memref<72x256xbf16, #tpu.memory_space<vmem>>, vector<8x256xbf16>
    tpu.vector_store %arg13[%c40, %c0_105], %125 {strides = array<i32>} : memref<72x256xbf16, #tpu.memory_space<vmem>>, vector<8x256xbf16>,
    %c0_106 = arith.constant 0 : index
    %c143_107 = arith.constant 143 : index
    %127 = vector.load %arg12[%c0_106, %c143_107] : memref<8x512xbf16, #tpu.memory_space<vmem>>, vector<8x256xbf16>
    %c0_108 = arith.constant 0 : index
    %c0_109 = arith.constant 0 : index
    %128 = vector.load %arg7[%c0_108, %c0_109] : memref<3x256xbf16, #tpu.memory_space<vmem>>, vector<1x256xbf16>
    %129 = vector.broadcast %128 : vector<1x256xbf16> to vector<8x256xbf16>
    %130 = arith.mulf %127, %129 : vector<8x256xbf16>
    %c48 = arith.constant 48 : index
    %c0_110 = arith.constant 0 : index
    %131 = vector.load %arg13[%c48, %c0_110] : memref<72x256xbf16, #tpu.memory_space<vmem>>, vector<8x256xbf16>
    tpu.vector_store %arg13[%c48, %c0_110], %130 {strides = array<i32>} : memref<72x256xbf16, #tpu.memory_space<vmem>>, vector<8x256xbf16>,
    %c0_111 = arith.constant 0 : index
    %c144_112 = arith.constant 144 : index
    %132 = vector.load %arg12[%c0_111, %c144_112] : memref<8x512xbf16, #tpu.memory_space<vmem>>, vector<8x256xbf16>
    %c1_113 = arith.constant 1 : index
    %c0_114 = arith.constant 0 : index
    %133 = vector.load %arg7[%c1_113, %c0_114] : memref<3x256xbf16, #tpu.memory_space<vmem>>, vector<1x256xbf16>
    %134 = vector.broadcast %133 : vector<1x256xbf16> to vector<8x256xbf16>
    %135 = arith.mulf %132, %134 : vector<8x256xbf16>
    %c56 = arith.constant 56 : index
    %c0_115 = arith.constant 0 : index
    %136 = vector.load %arg13[%c56, %c0_115] : memref<72x256xbf16, #tpu.memory_space<vmem>>, vector<8x256xbf16>
    tpu.vector_store %arg13[%c56, %c0_115], %135 {strides = array<i32>} : memref<72x256xbf16, #tpu.memory_space<vmem>>, vector<8x256xbf16>,
    %c0_116 = arith.constant 0 : index
    %c145_117 = arith.constant 145 : index
    %137 = vector.load %arg12[%c0_116, %c145_117] : memref<8x512xbf16, #tpu.memory_space<vmem>>, vector<8x256xbf16>
    %c2_118 = arith.constant 2 : index
    %c0_119 = arith.constant 0 : index
    %138 = vector.load %arg7[%c2_118, %c0_119] : memref<3x256xbf16, #tpu.memory_space<vmem>>, vector<1x256xbf16>
    %139 = vector.broadcast %138 : vector<1x256xbf16> to vector<8x256xbf16>
    %140 = arith.mulf %137, %139 : vector<8x256xbf16>
    %c64 = arith.constant 64 : index
    %c0_120 = arith.constant 0 : index
    %141 = vector.load %arg13[%c64, %c0_120] : memref<72x256xbf16, #tpu.memory_space<vmem>>, vector<8x256xbf16>
    tpu.vector_store %arg13[%c64, %c0_120], %140 {strides = array<i32>} : memref<72x256xbf16, #tpu.memory_space<vmem>>, vector<8x256xbf16>,
    %c0_121 = arith.constant 0 : index
    %c0_122 = arith.constant 0 : index
    %142 = vector.load %arg6[%c0_121, %c0_122] : memref<8x72xbf16, #tpu.memory_space<vmem>>, vector<8x72xbf16>
    %c0_123 = arith.constant 0 : index
    %c0_124 = arith.constant 0 : index
    %143 = vector.load %arg13[%c0_123, %c0_124] : memref<72x256xbf16, #tpu.memory_space<vmem>>, vector<72x256xbf16>
    %cst_125 = arith.constant dense<0.000000e+00> : vector<8x256xf32>
    %144 = tpu.matmul %142, %143, %cst_125 {dimension_numbers = #tpu.dot_dimension_numbers<[1], [0], [0], [1], [0, 0, 1, 1], [], []>} : vector<8x72xbf16>, vector<72x256xbf16>, vector<8x256xf32> -> vector<8x256xf32>
    %c0_126 = arith.constant 0 : index
    %c0_127 = arith.constant 0 : index
    %145 = vector.load %arg8[%c0_126, %c0_127] : memref<8x4xbf16, #tpu.memory_space<vmem>>, vector<8x4xbf16>
    %146 = arith.truncf %1 : vector<4x256xf32> to vector<4x256xbf16>
    %cst_128 = arith.constant dense<0.000000e+00> : vector<8x256xf32>
    %147 = tpu.matmul %145, %146, %cst_128 {dimension_numbers = #tpu.dot_dimension_numbers<[1], [0], [0], [1], [0, 0, 1, 1], [], []>} : vector<8x4xbf16>, vector<4x256xbf16>, vector<8x256xf32> -> vector<8x256xf32>
    %148 = arith.addf %144, %147 : vector<8x256xf32>
    %c0_129 = arith.constant 0 : index
    %c0_130 = arith.constant 0 : index
    %c0_131 = arith.constant 0 : index
    %149 = vector.load %arg9[%c0_129, %c0_130, %c0_131] : memref<1x8x256xf32, #tpu.memory_space<vmem>>, vector<1x8x256xf32>
    %150 = vector.shape_cast %149 : vector<1x8x256xf32> to vector<8x256xf32>
    %151 = vector.shape_cast %148 : vector<8x256xf32> to vector<1x8x256xf32>
    tpu.vector_store %arg9[%c0_129, %c0_130, %c0_131], %151 {strides = array<i32>} : memref<1x8x256xf32, #tpu.memory_space<vmem>>, vector<1x8x256xf32>,
    return
  }
  func.func @transform_0(%arg0: i32) -> (i32, i32, i32) {
    %c0_i32 = arith.constant 0 : i32
    %c0_i32_0 = arith.constant 0 : i32
    %c0_i32_1 = arith.constant 0 : i32
    return %arg0, %c0_i32, %c0_i32_0 : i32, i32, i32
  }
  func.func @transform_1(%arg0: i32) -> (i32, i32, i32) {
    %c0_i32 = arith.constant 0 : i32
    %c0_i32_0 = arith.constant 0 : i32
    %c0_i32_1 = arith.constant 0 : i32
    return %arg0, %c0_i32, %c0_i32_0 : i32, i32, i32
  }
  func.func @transform_2(%arg0: i32) -> (i32, i32) {
    %c0_i32 = arith.constant 0 : i32
    %c0_i32_0 = arith.constant 0 : i32
    %c0_i32_1 = arith.constant 0 : i32
    return %c0_i32, %c0_i32_0 : i32, i32
  }
  func.func @transform_3(%arg0: i32) -> (i32, i32) {
    %c0_i32 = arith.constant 0 : i32
    %c0_i32_0 = arith.constant 0 : i32
    %c0_i32_1 = arith.constant 0 : i32
    return %c0_i32, %c0_i32_0 : i32, i32
  }
  func.func @transform_4(%arg0: i32) -> (i32, i32) {
    %c0_i32 = arith.constant 0 : i32
    %c0_i32_0 = arith.constant 0 : i32
    %c0_i32_1 = arith.constant 0 : i32
    return %c0_i32, %c0_i32_0 : i32, i32
  }
  func.func @transform_5(%arg0: i32) -> (i32, i32) {
    %c0_i32 = arith.constant 0 : i32
    %c0_i32_0 = arith.constant 0 : i32
    %c0_i32_1 = arith.constant 0 : i32
    return %c0_i32, %c0_i32_0 : i32, i32
  }
  func.func @transform_6(%arg0: i32) -> (i32, i32) {
    %c0_i32 = arith.constant 0 : i32
    %c0_i32_0 = arith.constant 0 : i32
    %c0_i32_1 = arith.constant 0 : i32
    return %c0_i32, %c0_i32_0 : i32, i32
  }
  func.func @transform_7(%arg0: i32) -> (i32, i32) {
    %c0_i32 = arith.constant 0 : i32
    %c0_i32_0 = arith.constant 0 : i32
    %c0_i32_1 = arith.constant 0 : i32
    return %c0_i32, %c0_i32_0 : i32, i32
  }
  func.func @transform_8(%arg0: i32) -> (i32, i32, i32) {
    %c0_i32 = arith.constant 0 : i32
    %c0_i32_0 = arith.constant 0 : i32
    %c0_i32_1 = arith.constant 0 : i32
    return %arg0, %c0_i32, %c0_i32_0 : i32, i32, i32
  }
}

</mosaic_0001>

<bundles_post_ra>
// kernel: mem_res_layer_forward.1
= control target key start
LH: loop header
LB: loop body
LE: loop exit
PB: predicated region body
PF: predicated region fallthrough
CT: control target
= control target key end

     0   :  { %s2140_s27 = smov 0   ;;  %s2375_s0 = inlined_call_operand.vmem [shape: f32[2,4,256], index: 0, kind: input, shape index: {}]   ;;  %s2376_s1 = inlined_call_operand.vmem [shape: f32[2,16,256], index: 1, kind: input, shape index: {}]   ;;  %s2377_s2 = inlined_call_operand.vmem [shape: bf16[16,4], index: 2, kind: input, shape index: {}]   ;;  %s2378_s3 = inlined_call_operand.vmem [shape: f32[4,16], index: 3, kind: input, shape index: {}]   ;;  %s2379_s4 = inlined_call_operand.vmem [shape: bf16[8,36], index: 4, kind: input, shape index: {}]   ;;  %s2380_s5 = inlined_call_operand.vmem [shape: bf16[8,72], index: 5, kind: input, shape index: {}]   ;;  %s2381_s6 = inlined_call_operand.vmem [shape: bf16[3,256], index: 6, kind: input, shape index: {}]   ;;  %s2382_s7 = inlined_call_operand.vmem [shape: bf16[8,4], index: 7, kind: input, shape index: {}]   ;;  %s2383_s8 = inlined_call_operand.vmem [shape: f32[2,8,256], index: 8, kind: output, shape index: {}]  }
   0x1 LB: > { %s1960_s28 = sadd.s32 4294967295, %s2081_s27   ;;  %p1964_p0 = scmp.ge.s32.totalorder %s2081_s27, 1  ;;  %s2081_s27 = sphi %s2140_s27, %s18_s27  }
   0x2   : > { %p272_p1 = scmp.lt.s32.totalorder %s2081_s27, 3 }
   0x4   : > { %p273_p2 = pnand %p1964_p0, %p272_p1 }
   0x5   : > { %p311_p3 = scmp.lt.s32.totalorder (!%p273_p2), %s1960_s28, 1  ;;  %s2086_s17 = smov (!%p273_p2), 17  }
   0x6   : > { %276 = sbr.rel (%p273_p2) target bundleno = 1226 (0x4ca), region = 52  ;;  %s2087_s18 = smov (!%p273_p2), 15  }
   0x7   : > { %s2088_s19 = smov (!%p273_p2), 1   ;;  %s2089_s20 = smov (!%p273_p2), 16  }
   0x8   : > { %s2090_s21 = smov (!%p273_p2), 111   ;;  %s2091_s22 = smov (!%p273_p2), 112  }
   0x9   : > { %s2092_s23 = smov (!%p273_p2), 113   ;;  %s2093_s24 = smov (!%p273_p2), 127  }
   0xb   : > { %v2083_v0 = vmov 0   ;;  %s2385_s28 = smov (!%p311_p3, %s1960_s28), 1  ;;  %vm332_vm0 = vcmask 1043456   ;;  %vm376_vm1 = vcmask 1041408   ;;  %v2062_v28 = vld [vmem:[%s2377_s2] sm:$0xff]   ;;  %vm372_vm2 = vcmask 31744  }
   0xc   : > { %415 = vmatprep.mubr.bf16.mxu0 %v2083_v0  ;;  %566 = vst [vmem:[#allocation2] sm:$0x3] %v2083_v0  ;;  %567 = vst [vmem:[#allocation2 + $0x6] sm:$0x3] %v2083_v0  ;;  %1786 = vmatprep.mubr.bf16.mxu1 %v2083_v0  ;;  %s2038_s29 = sshll.u32 %s2385_s28, 3  ;;  %v440_v29 = vlaneseq  ;;  %v2085_v34 = vmov 0.0  }
   0xd   : > { %1271 = vst [vmem:[#allocation4] sm:$0xf] %v2083_v0  ;;  %1272 = vst [vmem:[#allocation4 + $0xc] sm:$0xf] %v2083_v0  ;;  %s315_s10 = scalar_lea.vmem %s2375_s0, %s2038_s29  ;;  %v2084_v31 = vmov 1983009808  }
   0xe   : > { %v2160_v1 = vld [vmem:[%s315_s10] sm:$0xff]  ;;  %v2173_v30 = vshrl.u32 %v440_v29, 7  ;;  %v614_v32 = vunpack.c.l.s4 %v2084_v31  ;;  %s2039_s25 = sshll.u32 %s2385_s28, 5 }
   0xf   : > { %v328_v2 = vmul.f32 %v2160_v1, %v2160_v1  ;;  %v1994_v36 = vld.sshfl [vmem:[%s2381_s6] sm:$0x22 pattern:$0x76325410]  ;;  %s320_s30 = scalar_lea.vmem %s2376_s1, %s2039_s25 }
  0x10   : > { %v742_v33 = vsub.s32 1, %v2173_v30  ;;  %v601_v35 = vsub.s32 0, %v2173_v30  ;;  %v615_v37 = vunpack.c.0.s8 %v614_v32  ;;  %v1126_v38 = vcombine.high %v1994_v36, %v1994_v36  ;;  %v1992_v40 = vld.sshfl [vmem:[%s2381_s6] sm:$0x11 pattern:$0x76325410] }
  0x11   : > { %v330_v3 = vcombine.high %v328_v2, %v328_v2  ;;  %v333_v4 = vsel %vm332_vm0, %v328_v2, 0.0  ;;  %v1128_v39 = vpack.i.b16 %v1994_v36, %v1994_v36  ;;  %v990_v41 = vcombine.high %v1992_v40, %v1992_v40  ;;  %v363_v63 = vld [vmem:[%s320_s30] sm:$0xff] }
  0x12   : > { %v334_v5 = vrot.slane %v333_v4, 4  ;;  %v992_v42 = vpack.i.b16 %v1992_v40, %v1992_v40  ;;  %v1059_v43 = vshrl.u32 %v1992_v40, 16  ;;  %v1135_v45 = vpack.i.b16 %v1126_v38, %v1126_v38 }
  0x13   : > { %v340_v6 = vsel %vm332_vm0, %v330_v3, 0.0  ;;  %v1133_v44 = vrot.slane %v1128_v39, %v742_v33  ;;  %v999_v47 = vpack.i.b16 %v990_v41, %v990_v41  ;;  %v1067_v49 = vshrl.u32 %v990_v41, 16  ;;  %v365_v3 = vld [vmem:[%s320_s30 + $0x10] sm:$0xff] }
  0x14   : > { %v335_v7 = vadd.f32 %v334_v5, %v333_v4  ;;  %v341_v8 = vrot.slane %v340_v6, 4  ;;  %v997_v46 = vrot.slane %v992_v42, %v601_v35  ;;  %v1060_v48 = vpack.i.b16 %v1059_v43, %v1059_v43  ;;  %v364_v4 = vld [vmem:[%s320_s30 + $0x8] sm:$0xff] }
  0x15   : > { %v2184_v50 = vsub.s32 %v615_v37, %v2173_v30  ;;  %v1140_v51 = vrot.slane %v1135_v45, %v742_v33  ;;  %v1004_v52 = vrot.slane %v999_v47, %v601_v35  ;;  %v1068_v54 = vpack.i.b16 %v1067_v49, %v1067_v49  ;;  %v485_v47 = vld [vmem:[%s2378_s3] sm:$0xf] }
  0x16   : > { %v336_v9 = vrot.slane %v335_v7, 2  ;;  %v342_v10 = vadd.f32 %v341_v8, %v340_v6  ;;  %v1065_v53 = vrot.slane %v1060_v48, %v601_v35  ;;  %v366_v6 = vld [vmem:[%s320_s30 + $0x18] sm:$0xff] }
  0x17   : > { %v2186_v55 = vcombine.low %v1133_v44, %v1140_v51  ;;  %v2188_v56 = vcombine.low %v997_v46, %v1004_v52  ;;  %v1073_v57 = vrot.slane %v1068_v54, %v601_v35  ;;  %v2094_v46 = vmov 1.0  }
  0x18   : > { %v337_v11 = vadd.f32 %v336_v9, %v335_v7  ;;  %v343_v12 = vrot.slane %v342_v10, 2 }
  0x19   : > { %v1150_v58 = vrot.slane %v2186_v55, %v2184_v50  ;;  %v1014_v59 = vrot.slane %v2188_v56, %v2184_v50  ;;  %v2194_v60 = vcombine.low %v1065_v53, %v1073_v57 }
  0x1a   : > { %v338_v13 = vrot.slane %v337_v11, 1  ;;  %v344_v14 = vadd.f32 %v343_v12, %v342_v10 }
  0x1b   : > { %1151 = vrot.lane.b32.xlu0 %v1150_v58, %s2086_s17  ;;  %1015 = vrot.lane.b32.xlu1 %v1014_v59, %s2087_s18  ;;  %v2200_v61 = vrot.slane %v2194_v60, %v2184_v50 }
  0x1c   : > { %v339_v15 = vadd.f32 %v338_v13, %v337_v11  ;;  %v345_v16 = vrot.slane %v344_v14, 1 }
  0x1e   : > { %v346_v17 = vadd.f32 %v345_v16, %v344_v14  ;;  %v347_v18 = vmax.f32 %v339_v15, 1e-24 }
  0x1f   : > { %948 = vrot.lane.b32.xlu0 %v1150_v58, %s2088_s19  ;;  %1084 = vrot.lane.b32.xlu1 %v2200_v61, %s2089_s20 }
  0x20   : > { %v348_v19 = vmax.f32 %v346_v17, 1e-24  ;;  %2071 = vrsqrt.f32 %v347_v18 }
  0x22   : > { %2073 = vrsqrt.f32 %v348_v19 }
  0x23   : > { %620 = vrot.lane.b32.xlu0 %v1014_v59, %s2090_s21  ;;  %692 = vrot.lane.b32.xlu1 %v2200_v61, %s2091_s22 }
  0x27   : > { %761 = vrot.lane.b32.xlu0 %v1150_v58, %s2092_s23  ;;  %830 = vrot.lane.b32.xlu1 %v1014_v59, %s2093_s24 }
  0x2d   : > { %v2072_v20 = vpop.eup %2071 }
  0x2f   : > { %v2074_v21 = vpop.eup %2073 }
  0x30   : > { %v353_v22 = vcombine.low %v2072_v20, %v2074_v21 }
  0x32   : > { %v355_v23 = vmul.f32 %v353_v22, %v2160_v1 }
  0x34   : > { %v359_v24 = vcombine.high %v355_v23, %v355_v23  ;;  %v361_v25 = vpack.c.bf16 %v355_v23, %v355_v23  ;;  %v442_v23 = vadd.s32 8, %v2173_v30 }
  0x36   : > { %v362_v26 = vpack.c.bf16 %v359_v24, %v359_v24  ;;  %v378_v27 = vsel %vm376_vm1, %v361_v25, 0 }
  0x38   : > { %1972 = vmatprep.subr.msk.bf16.mxu0 %vm376_vm1, %v362_v26 }
  0x39   : > { %398 = vmatpush1.bf16.msra.mxu0 %v378_v27 }
  0x3c   : > { %1973 = vmatmul.mubr.msk.bf16.vlgmr.msra.gmra.mxu0 %vm372_vm2, %v2062_v28 }
  0x3d   : > { %554 = vmatprep.mubr.f32.mxu0 %v2085_v34 }
  0x8d   : > { %v1152_v52 = vpop.permute.xlu0 %1151  ;;  %v1016_v57 = vpop.permute.xlu1 %1015 }
  0x91   : > { %v949_v59 = vpop.permute.xlu0 %948 }
  0xfc   : > { %v417_v62 = vpop.f32.mrf.mxu0 }
  0xfd   : > { %v418_v7 = vadd.f32 %v417_v62, %v363_v63  ;;  %v1085_v62 = vpop.permute.xlu1 %1084  ;;  %v1153_v63 = vrot.slane %v1152_v52, 6 }
  0xfe   : > { %v419_v2 = vpop.f32.mrf.mxu0 }
  0xff   : > { %v420_v10 = vadd.f32 %v419_v2, %v364_v4  ;;  %v621_v2 = vpop.permute.xlu0 %620 }
 0x100   : > { %v421_v5 = vpop.f32.mrf.mxu0 }
 0x101   : > { %v422_v8 = vadd.f32 %v421_v5, %v365_v3  ;;  %v1086_v3 = vrot.slane %v1085_v62, 6 }
 0x102   : > { %v423_v9 = vpop.f32.mrf.mxu0 }
 0x103   : > { %v426_v11 = vmax.f32 %v418_v7, %v422_v8  ;;  %v424_v12 = vadd.f32 %v423_v9, %v366_v6 }
 0x105   : > { %v427_v13 = vrot.slane %v426_v11, 4  ;;  %v433_v14 = vmax.f32 %v420_v10, %v424_v12 }
 0x107   : > { %v428_v15 = vmax.f32 %v426_v11, %v427_v13  ;;  %v434_v16 = vrot.slane %v433_v14, 4  ;;  %v693_v11 = vpop.permute.xlu1 %692 }
 0x109   : > { %v429_v17 = vrot.slane %v428_v15, 2  ;;  %v435_v18 = vmax.f32 %v433_v14, %v434_v16 }
 0x10b   : > { %v430_v19 = vmax.f32 %v428_v15, %v429_v17  ;;  %v436_v20 = vrot.slane %v435_v18, 2  ;;  %v694_v17 = vrot.slane %v693_v11, 6 }
 0x10d   : > { %v431_v21 = vrot.slane %v430_v19, 1  ;;  %v437_v22 = vmax.f32 %v435_v18, %v436_v20  ;;  %v622_v18 = vrot.slane %v621_v2, 6 }
 0x10f   : > { %v432_v24 = vmax.f32 %v430_v19, %v431_v21  ;;  %v438_v25 = vrot.slane %v437_v22, 1  ;;  %v762_v19 = vpop.permute.xlu0 %761 }
 0x111   : > { %vm443_vm3 = vcmp.eq.f32.partialorder %v418_v7, %v432_v24  ;;  %vm445_vm4 = vcmp.eq.f32.partialorder %v422_v8, %v432_v24  ;;  %v439_v26 = vmax.f32 %v437_v22, %v438_v25  ;;  %v1017_v7 = vrot.slane %v1016_v57, 6 }
 0x112   : > { %v447_v27 = vsel %vm443_vm3, %v2173_v30, 16  ;;  %v449_v28 = vsel %vm445_vm4, %v442_v23, 16 }
 0x113   : > { %vm451_vm5 = vcmp.lt.s32.totalorder %v447_v27, %v449_v28  ;;  %vm444_vm6 = vcmp.eq.f32.partialorder %v420_v10, %v439_v26  ;;  %vm446_vm7 = vcmp.eq.f32.partialorder %v424_v12, %v439_v26 }
 0x114   : > { %v452_v29 = vsel %vm451_vm5, %v447_v27, %v449_v28  ;;  %v448_v31 = vsel %vm444_vm6, %v2173_v30, 16  ;;  %v450_v32 = vsel %vm446_vm7, %v442_v23, 16  ;;  %vm486_vm5 = vcmask 130048  }
 0x115   : > { %v453_v33 = vrot.slane %v452_v29, 4  ;;  %vm462_vm8 = vcmp.lt.s32.totalorder %v448_v31, %v450_v32  ;;  %vm651_vm7 = vcmask 138240   ;;  %v1087_v16 = vsel %vm486_vm5, %v1086_v3, %v1085_v62 }
 0x116   : > { %v463_v34 = vsel %vm462_vm8, %v448_v31, %v450_v32  ;;  %vm860_vm8 = vcmask 7168   ;;  %v1154_v6 = vsel %vm651_vm7, %v1153_v63, %v1152_v52  ;;  %v763_v28 = vrot.slane %v762_v19, 6 }
 0x117   : > { %vm454_vm9 = vcmp.lt.s32.totalorder %v452_v29, %v453_v33  ;;  %v464_v35 = vrot.slane %v463_v34, 4 }
 0x118   : > { %v455_v36 = vsel %vm454_vm9, %v452_v29, %v453_v33  ;;  %vm791_vm9 = vcmask 121856  }
 0x119   : > { %v456_v37 = vrot.slane %v455_v36, 2  ;;  %vm465_vm10 = vcmp.lt.s32.totalorder %v463_v34, %v464_v35  ;;  %v1018_v20 = vsel %vm791_vm9, %v1017_v7, %v1016_v57 }
 0x11a   : > { %v466_v38 = vsel %vm465_vm10, %v463_v34, %v464_v35  ;;  %vm695_vm10 = vcmask 916480  }
 0x11b   : > { %vm457_vm11 = vcmp.lt.s32.totalorder %v455_v36, %v456_v37  ;;  %v467_v39 = vrot.slane %v466_v38, 2  ;;  %v696_v25 = vsel %vm695_vm10, %v694_v17, %v693_v11 }
 0x11c   : > { %v458_v40 = vsel %vm457_vm11, %v455_v36, %v456_v37  ;;  %vm623_vm11 = vcmask 908288   ;;  %v831_v37 = vpop.permute.xlu1 %830 }
 0x11d   : > { %vm468_vm12 = vcmp.lt.s32.totalorder %v466_v38, %v467_v39  ;;  %v459_v41 = vrot.slane %v458_v40, 1  ;;  %v624_v27 = vsel %vm623_vm11, %v622_v18, %v621_v2 }
 0x11e   : > { %v469_v42 = vsel %vm468_vm12, %v466_v38, %v467_v39  ;;  %vm764_vm12 = vcmask 924672  }
 0x11f   : > { %v470_v43 = vrot.slane %v469_v42, 1  ;;  %vm460_vm13 = vcmp.lt.s32.totalorder %v458_v40, %v459_v41  ;;  %v765_v35 = vsel %vm764_vm12, %v763_v28, %v762_v19 }
 0x120   : > { %v461_v44 = vsel %vm460_vm13, %v458_v40, %v459_v41  ;;  %vm833_vm13 = vcmask 1039360   ;;  %v832_v41 = vrot.slane %v831_v37, 6 }
 0x121   : > { %vm471_vm14 = vcmp.lt.s32.totalorder %v469_v42, %v470_v43  ;;  %vm475_vm3 = vcmp.eq.s32.totalorder %v442_v23, %v461_v44  ;;  %vm473_vm6 = vcmp.eq.s32.totalorder %v2173_v30, %v461_v44 }
 0x122   : > { %v472_v45 = vsel %vm471_vm14, %v469_v42, %v470_v43  ;;  %vm1214_vm14 = vcmask 293888  }
 0x123   : > { %vm476_vm15 = vcmp.eq.s32.totalorder %v442_v23, %v472_v45  ;;  %vm474_vm4 = vcmp.eq.s32.totalorder %v2173_v30, %v472_v45  ;;  %v950_v30 = vrot.slane %v949_v59, 6 }
 0x124   : > { %1978 = vmatprep.subr.msk.mxu0 %vm476_vm15, %v2094_v46 }
 0x125   : > { %1979 = vmatpush1.msk.msra.mxu0 %vm475_vm3, %v2094_v46  ;;  %v951_v10 = vsel %vm860_vm8, %v950_v30, %v949_v59 }
 0x126   : > { %1980 = vmatprep.subr.msk.mxu0 %vm474_vm4, %v2094_v46 }
 0x127   : > { %1981 = vmatpush1.msk.msra.mxu0 %vm473_vm6, %v2094_v46  ;;  %v834_v46 = vsel %vm833_vm13, %v832_v41, %v831_v37 }
 0x128   : > { %1982 = vmatmul.mubr.msk.f32.vlgmr.msra.gmra.mxu0 %vm486_vm5, %v485_v47 }
 0x129   : > { %1256 = vmatprep.mubr.bf16.mxu0 %v2083_v0 }
 0x1e8   : > { %v556_v48 = vpop.f32.mrf.mxu0 }
 0x1ea   : > { %v558_v49 = vpop.f32.mrf.mxu0 }
 0x1eb   : > { %v563_v51 = vcombine.low %v556_v48, %v558_v49 }
 0x1ed   : > { %v565_v53 = vadd.f32 %v563_v51, %v2160_v1 }
 0x1ef   : > { %v569_v54 = vcombine.high %v565_v53, %v565_v53 }
 0x1f1   : > { %v1983_v58 = vpack.c.bf16 %v569_v54, %v565_v53 }
 0x1f3   : > { %1984 = vst.sshfl [vmem:[#allocation2 + $0x2] sm:$0x33 pattern:$0x76325410] %v1983_v58 }
 0x1fa   : > { %v864_v4 = vld [vmem:[#allocation2 + $0x2] sm:$0xf] }
 0x1fb   : > { %v1116_v5 = vld [vmem:[#allocation2 + $0x2] sm:$0x3f]  ;;  %v902_v12 = vmul.bf16 %v2200_v61, %v864_v4 }
 0x1fc   : > { %v1156_v8 = vmul.bf16 %v1154_v6, %v1116_v5  ;;  %v913_v9 = vld [vmem:[#allocation2 + $0x2] sm:$0x3f] }
 0x1fd   : > { %v980_v13 = vld [vmem:[#allocation2 + $0x2] sm:$0x3f]  ;;  %v953_v14 = vmul.bf16 %v951_v10, %v913_v9  ;;  %1990 = vst.sshfl [vmem:[#allocation3 + $0x10] sm:$0xf pattern:$0x76325410] %v902_v12 }
 0x1fe   : > { %v1047_v15 = vld [vmem:[#allocation2 + $0x2] sm:$0x3f]  ;;  %v1020_v21 = vmul.bf16 %v1018_v20, %v980_v13  ;;  %v1165_v23 = vrot.slane %v1156_v8, %v2184_v50  ;;  %v1158_v36 = vcombine.high %v1156_v8, %v1156_v8 }
 0x1ff   : > { %v1089_v22 = vmul.bf16 %v1087_v16, %v1047_v15  ;;  %v969_v24 = vrot.slane %v953_v14, %v2184_v50  ;;  %v655_v61 = vld [vmem:[#allocation2] sm:$0x3f]  ;;  %v955_v43 = vcombine.low %v953_v14, %v953_v14 }
 0x200   : > { %v585_v26 = vld [vmem:[#allocation2] sm:$0x3f]  ;;  %1173 = vrot.lane.b32.xlu0 %v1165_v23, %s2090_s21  ;;  %v698_v29 = vmul.bf16 %v696_v25, %v655_v61  ;;  %v1029_v32 = vrot.slane %v1020_v21, %v2184_v50  ;;  %v1022_v42 = vcombine.high %v1020_v21, %v1020_v21  ;;  %v1172_v44 = vrot.slane %v1158_v36, %v2184_v50 }
 0x201   : > { %972 = vrot.lane.b32.xlu1 %v969_v24, %s2093_s24  ;;  %v626_v31 = vmul.bf16 %v624_v27, %v585_v26  ;;  %v1105_v33 = vrot.slane %v1089_v22, %v2184_v50  ;;  %v726_v34 = vld [vmem:[#allocation2] sm:$0x3f]  ;;  %v1091_v47 = vcombine.low %v1089_v22, %v1089_v22  ;;  %v962_v52 = vrot.slane %v955_v43, %v2184_v50 }
 0x202   : > { %v767_v38 = vmul.bf16 %v765_v35, %v726_v34  ;;  %v714_v39 = vrot.slane %v698_v29, %v2184_v50  ;;  %v795_v49 = vld [vmem:[#allocation2] sm:$0x3f]  ;;  %v1036_v51 = vrot.slane %v1022_v42, %v2184_v50  ;;  %v700_v54 = vcombine.low %v698_v29, %v698_v29 }
 0x203   : > { %v635_v40 = vrot.slane %v626_v31, %v2184_v50  ;;  %v628_v48 = vcombine.high %v626_v31, %v626_v31  ;;  %v836_v53 = vmul.bf16 %v834_v46, %v795_v49  ;;  %v1098_v58 = vrot.slane %v1091_v47, %v2184_v50 }
 0x204   : > { %1037 = vrot.lane.b32.xlu0 %v1029_v32, %s2092_s23  ;;  %v776_v45 = vrot.slane %v767_v38, %v2184_v50  ;;  %v769_v57 = vcombine.high %v767_v38, %v767_v38  ;;  %v707_v63 = vrot.slane %v700_v54, %v2184_v50 }
 0x205   : > { %1108 = vrot.lane.b32.xlu1 %v1105_v33, %s2091_s22  ;;  %v642_v59 = vrot.slane %v628_v48, %v2184_v50  ;;  %v838_v62 = vcombine.low %v836_v53, %v836_v53  ;;  %v852_v3 = vrot.slane %v836_v53, %v2184_v50  ;;  %v1679_v53 = vld [vmem:[#allocation4 + $0xc] sm:$0xf] }
 0x206   : > { %v783_v30 = vrot.slane %v769_v57, %v2184_v50 }
 0x207   : > { %v845_v2 = vrot.slane %v838_v62, %v2184_v50 }
 0x208   : > { %643 = vrot.lane.b32.xlu0 %v635_v40, %s2086_s17 }
 0x209   : > { %717 = vrot.lane.b32.xlu1 %v714_v39, %s2089_s20 }
 0x20c   : > { %784 = vrot.lane.b32.xlu0 %v776_v45, %s2087_s18 }
 0x20d   : > { %1175 = vrot.lane.b32.xlu1 %v1172_v44, %s2090_s21 }
 0x210   : > { %970 = vrot.lane.b32.xlu0 %v962_v52, %s2093_s24 }
 0x211   : > { %1039 = vrot.lane.b32.xlu1 %v1036_v51, %s2092_s23 }
 0x214   : > { %1106 = vrot.lane.b32.xlu0 %v1098_v58, %s2091_s22 }
 0x215   : > { %645 = vrot.lane.b32.xlu1 %v642_v59, %s2086_s17 }
 0x218   : > { %715 = vrot.lane.b32.xlu0 %v707_v63, %s2089_s20 }
 0x219   : > { %786 = vrot.lane.b32.xlu1 %v783_v30, %s2087_s18 }
 0x21c   : > { %853 = vrot.lane.b32.xlu0 %v845_v2, %s2088_s19 }
 0x21d   : > { %855 = vrot.lane.b32.xlu1 %v852_v3, %s2088_s19  ;;  %v1183_v3 = vld [vmem:[%s2379_s4] sm:$0xf] }
 0x220   : > { %1709 = vrot.lane.b32.xlu0 %v2186_v55, %s2086_s17 }
 0x221   : > { %1605 = vrot.lane.b32.xlu1 %v2188_v56, %s2087_s18 }
 0x224   : > { %1658 = vrot.lane.b32.xlu0 %v2194_v60, %s2089_s20 }
 0x225   : > { %1554 = vrot.lane.b32.xlu1 %v2186_v55, %s2088_s19 }
 0x228   : > { %1417 = vrot.lane.b32.xlu0 %v2186_v55, %s2092_s23 }
 0x229   : > { %1468 = vrot.lane.b32.xlu1 %v2188_v56, %s2093_s24 }
 0x22c   : > { %1313 = vrot.lane.b32.xlu0 %v2188_v56, %s2090_s21 }
 0x22d   : > { %1366 = vrot.lane.b32.xlu1 %v2194_v60, %s2091_s22 }
 0x272   : > { %v1174_v50 = vpop.permute.xlu0 %1173 }
 0x273   : > { %v973_v4 = vpop.permute.xlu1 %972  ;;  %v1177_v11 = vrot.slane %v1174_v50, 4 }
 0x274   : > { %v975_v16 = vrot.slane %v973_v4, 4 }
 0x276   : > { %v1038_v5 = vpop.permute.xlu0 %1037 }
 0x277   : > { %v1109_v6 = vpop.permute.xlu1 %1108  ;;  %v1041_v17 = vrot.slane %v1038_v5, 4 }
 0x278   : > { %v1111_v61 = vrot.slane %v1109_v6, 4 }
 0x27a   : > { %v644_v8 = vpop.permute.xlu0 %643 }
 0x27b   : > { %v718_v7 = vpop.permute.xlu1 %717  ;;  %v647_v25 = vrot.slane %v644_v8, 4 }
 0x27c   : > { %v720_v31 = vrot.slane %v718_v7, 4 }
 0x27e   : > { %v785_v10 = vpop.permute.xlu0 %784 }
 0x27f   : > { %v1176_v9 = vpop.permute.xlu1 %1175  ;;  %v788_v32 = vrot.slane %v785_v10, 4 }
 0x280   : > { %v1178_v12 = vrot.slane %v1176_v9, 4 }
 0x282   : > { %v1179_v13 = vsel %vm332_vm0, %v1177_v11, %v1178_v12  ;;  %v971_v15 = vpop.permute.xlu0 %970 }
 0x283   : > { %v1180_v55 = vsel %vm623_vm11, %v1174_v50, %v1179_v13  ;;  %v1040_v14 = vpop.permute.xlu1 %1039  ;;  %v974_v18 = vrot.slane %v971_v15, 4  ;;  %v1575_v50 = vld [vmem:[#allocation4 + $0xc] sm:$0xf] }
 0x284   : > { %1182 = vst [vmem:[#allocation3 + $0x20] sm:$0x33] %v1180_v55  ;;  %v1042_v56 = vrot.slane %v1040_v14, 4  ;;  %v1524_v13 = vld [vmem:[#allocation4 + $0xc] sm:$0xf] }
 0x285   : > { %v976_v20 = vsel %vm332_vm0, %v974_v18, %v975_v16 }
 0x286   : > { %v1043_v19 = vsel %vm332_vm0, %v1041_v17, %v1042_v56  ;;  %v977_v22 = vsel %vm833_vm13, %v971_v15, %v976_v20  ;;  %v1107_v23 = vpop.permute.xlu0 %1106  ;;  %v1741_v17 = vcombine.high %v2160_v1, %v2160_v1  ;;  %v1743_v20 = vpack.c.bf16 %v2160_v1, %v2160_v1  ;;  %v1739_v1 = vld [vmem:[%s2382_s7] sm:$0xf] }
 0x287   : > { %v1044_v21 = vsel %vm764_vm12, %v1038_v5, %v1043_v19  ;;  %v646_v24 = vpop.permute.xlu1 %645  ;;  %979 = vst [vmem:[#allocation3 + $0x10] sm:$0xcc] %v977_v22  ;;  %v1110_v26 = vrot.slane %v1107_v23, 4 }
 0x288   : > { %1046 = vst [vmem:[#allocation3 + $0x18] sm:$0x33] %v1044_v21  ;;  %v648_v27 = vrot.slane %v646_v24, 4  ;;  %v1744_v19 = vpack.c.bf16 %v1741_v17, %v1741_v17 }
 0x289   : > { %v1112_v28 = vsel %vm332_vm0, %v1110_v26, %v1111_v61 }
 0x28a   : > { %v650_v29 = vsel %vm332_vm0, %v647_v25, %v648_v27  ;;  %v1113_v33 = vsel %vm695_vm10, %v1107_v23, %v1112_v28  ;;  %v716_v35 = vpop.permute.xlu0 %715  ;;  %2022 = vmatprep.subr.msk.bf16.mxu1 %vm376_vm1, %v1744_v19  ;;  %v1749_v23 = vsel %vm376_vm1, %v1743_v20, 0 }
 0x28b   : > { %v652_v34 = vsel %vm651_vm7, %v644_v8, %v650_v29  ;;  %v787_v36 = vpop.permute.xlu1 %786  ;;  %v1188_v37 = vld [vmem:[#allocation3 + $0x20] sm:$0x33]  ;;  %1115 = vst [vmem:[#allocation3 + $0x18] sm:$0xcc] %v1113_v33  ;;  %v719_v38 = vrot.slane %v716_v35, 4  ;;  %1769 = vmatpush1.bf16.msra.mxu1 %v1749_v23 }
 0x28c   : > { %654 = vst [vmem:[#allocation3] sm:$0x33] %v652_v34  ;;  %v789_v39 = vrot.slane %v787_v36, 4  ;;  %v2000_v40 = vcombine.high %v1188_v37, %v1188_v37  ;;  %v1999_v41 = vcombine.low %v1188_v37, %v1188_v37  ;;  %v1626_v8 = vld [vmem:[#allocation4 + $0xc] sm:$0xf] }
 0x28d   : > { %v721_v42 = vsel %vm332_vm0, %v719_v38, %v720_v31 }
 0x28e   : > { %v790_v43 = vsel %vm332_vm0, %v788_v32, %v789_v39  ;;  %2001 = vmatprep.subr.msk.bf16.mxu0 %vm376_vm1, %v2000_v40  ;;  %v1219_v44 = vsel %vm376_vm1, %v1999_v41, 0  ;;  %v723_v45 = vsel %vm486_vm5, %v716_v35, %v721_v42  ;;  %v854_v47 = vpop.permute.xlu0 %853  ;;  %2023 = vmatmul.mubr.msk.bf16.vlgmr.msra.gmra.mxu1 %vm372_vm2, %v1739_v1  ;;  %vm1840_vm1 = vcmask 588800  }
 0x28f   : > { %v792_v46 = vsel %vm791_vm9, %v785_v10, %v790_v43  ;;  %1235 = vmatpush1.bf16.msra.mxu0 %v1219_v44  ;;  %v856_v48 = vpop.permute.xlu1 %855  ;;  %725 = vst [vmem:[#allocation3] sm:$0xcc] %v723_v45  ;;  %v857_v49 = vrot.slane %v854_v47, 4  ;;  %1882 = vmatprep.mubr.bf16.mxu1 %v2083_v0 }
 0x290   : > { %794 = vst [vmem:[#allocation3 + $0x8] sm:$0x33] %v792_v46  ;;  %v858_v51 = vrot.slane %v856_v48, 4 }
 0x292   : > { %v859_v52 = vsel %vm332_vm0, %v857_v49, %v858_v51  ;;  %v2065_v57 = vld [vmem:[#allocation3 + $0x10] ss:$8 sps:$4 sm:$0xff]   ;;  %v2067_v58 = vld [vmem:[#allocation3 + $0x14] ss:$8 sps:$4 sm:$0xff]   ;;  %v1710_v59 = vpop.permute.xlu0 %1709 }
 0x293   : > { %v861_v54 = vsel %vm860_vm8, %v854_v47, %v859_v52  ;;  %v1711_v62 = vrot.slane %v1710_v59, 4  ;;  %1236 = vmatprep.subr.bf16.mxu0 %v2067_v58  ;;  %v1606_v4 = vpop.permute.xlu1 %1605 }
 0x294   : > { %863 = vst [vmem:[#allocation3 + $0x8] sm:$0xcc] %v861_v54  ;;  %1237 = vmatpush1.bf16.msra.mxu0 %v2065_v57  ;;  %v1607_v5 = vrot.slane %v1606_v4, 4 }
 0x295   : > { %v1716_v63 = vmul.bf16 %v1711_v62, %v1679_v53  ;;  %v1712_v28 = vsel %vm651_vm7, %v1711_v62, %v1710_v59 }
 0x296   : > { %v1608_v6 = vsel %vm791_vm9, %v1607_v5, %v1606_v4  ;;  %v1612_v7 = vmul.bf16 %v1607_v5, %v1575_v50  ;;  %v1659_v9 = vpop.permute.xlu0 %1658 }
 0x297   : > { %1721 = vrot.lane.b32.xlu1 %v1716_v63, %s2090_s21  ;;  %v1555_v10 = vpop.permute.xlu1 %1554  ;;  %v1660_v11 = vrot.slane %v1659_v9, 4 }
 0x298   : > { %v1556_v12 = vrot.slane %v1555_v10, 4 }
 0x299   : > { %v1661_v55 = vsel %vm486_vm5, %v1660_v11, %v1659_v9  ;;  %v1665_v14 = vmul.bf16 %v1660_v11, %v1626_v8 }
 0x29a   : > { %v1557_v15 = vsel %vm860_vm8, %v1556_v12, %v1555_v10  ;;  %v1561_v16 = vmul.bf16 %v1556_v12, %v1524_v13  ;;  %v1418_v31 = vpop.permute.xlu0 %1417 }
 0x29b   : > { %v2068_v30 = vld [vmem:[#allocation3] ss:$8 sps:$4 sm:$0xff]   ;;  %v2070_v2 = vld [vmem:[#allocation3 + $0x4] ss:$8 sps:$4 sm:$0xff]   ;;  %1617 = vrot.lane.b32.xlu1 %v1612_v7, %s2092_s23  ;;  %v1419_v32 = vrot.slane %v1418_v31, 4  ;;  %v1469_v35 = vpop.permute.xlu1 %1468 }
 0x29c   : > { %1238 = vmatprep.subr.bf16.mxu0 %v2070_v2  ;;  %v1470_v38 = vrot.slane %v1469_v35, 4 }
 0x29d   : > { %1239 = vmatpush1.bf16.msra.mxu0 %v2068_v30  ;;  %v1420_v44 = vsel %vm764_vm12, %v1419_v32, %v1418_v31 }
 0x29e   : > { %v1314_v40 = vpop.permute.xlu0 %1313  ;;  %v1471_v51 = vsel %vm833_vm13, %v1470_v38, %v1469_v35 }
 0x29f   : > { %1670 = vrot.lane.b32.xlu1 %v1665_v14, %s2091_s22  ;;  %v1315_v42 = vrot.slane %v1314_v40, 4  ;;  %v1367_v46 = vpop.permute.xlu1 %1366 }
 0x2a0   : > { %2002 = vmatmul.mubr.msk.bf16.vlgmr.msra.gmra.mxu0 %vm1214_vm14, %v1183_v3  ;;  %v1368_v49 = vrot.slane %v1367_v46, 4 }
 0x2a1   : > { %v1316_v57 = vsel %vm623_vm11, %v1315_v42, %v1314_v40 }
 0x2a2   : > { %v1369_v59 = vsel %vm695_vm10, %v1368_v49, %v1367_v46 }
 0x2a3   : > { %1566 = vrot.lane.b32.xlu1 %v1561_v16, %s2093_s24 }
 0x309   : > { %v1722_v63 = vpop.permute.xlu1 %1721 }
 0x30a   : > { %v1724_v3 = vrot.slane %v1722_v63, 4 }
 0x30d   : > { %v1618_v30 = vpop.permute.xlu1 %1617 }
 0x30e   : > { %v1620_v9 = vrot.slane %v1618_v30, 4 }
 0x311   : > { %v1671_v2 = vpop.permute.xlu1 %1670 }
 0x312   : > { %v1673_v13 = vrot.slane %v1671_v2, 4 }
 0x315   : > { %v1567_v5 = vpop.permute.xlu1 %1566 }
 0x360   : > { %v1258_v56 = vpop.f32.mrf.mxu0 }
 0x361   : > { %v1267_v18 = vmul.f32 0.02, %v1258_v56  ;;  %vm1265_vm15 = vcmp.ge.f32.partialorder %v1258_v56, 0.0 }
 0x362   : > { %v1260_v21 = vpop.f32.mrf.mxu0 }
 0x363   : > { %vm1266_vm3 = vcmp.ge.f32.partialorder %v1260_v21, 0.0  ;;  %v1268_v22 = vmul.f32 0.02, %v1260_v21  ;;  %v1269_v61 = vsel %vm1265_vm15, %v1258_v56, %v1267_v18  ;;  %v1569_v56 = vrot.slane %v1567_v5, 4 }
 0x364   : > { %v1262_v24 = vpop.f32.mrf.mxu0 }
 0x365   : > { %v1270_v25 = vsel %vm1266_vm3, %v1260_v21, %v1268_v22 }
 0x366   : > { %v2316_v26 = vpack.c.bf16 %v1270_v25, %v1269_v61  ;;  %v1263_v27 = vpop.f32.mrf.mxu0 }
 0x368   : > { %1281 = vst [vmem:[#allocation4 + $0x4] sm:$0xff] %v2316_v26  ;;  %v1715_v29 = vmul.bf16 %v2316_v26, %v1712_v28  ;;  %v1611_v33 = vmul.bf16 %v2316_v26, %v1608_v6  ;;  %v1664_v36 = vmul.bf16 %v2316_v26, %v1661_v55  ;;  %v1560_v0 = vmul.bf16 %v2316_v26, %v1557_v15 }
 0x369   : > { %v1521_v25 = vmul.bf16 %v2316_v26, %v2194_v60 }
 0x36a   : > { %1719 = vrot.lane.b32.xlu0 %v1715_v29, %s2090_s21 }
 0x36e   : > { %1615 = vrot.lane.b32.xlu0 %v1611_v33, %s2092_s23 }
 0x36f   : > { %v1387_v34 = vld [vmem:[#allocation4 + $0x8] sm:$0xf]  ;;  %v1386_v43 = vld [vmem:[#allocation4] sm:$0xff] }
 0x370   : > { %v1424_v37 = vmul.bf16 %v1419_v32, %v1387_v34  ;;  %v1438_v39 = vld [vmem:[#allocation4 + $0x8] sm:$0xf]  ;;  %v1423_v47 = vmul.bf16 %v1420_v44, %v1386_v43  ;;  %v1474_v53 = vmul.bf16 %v1471_v51, %v1386_v43  ;;  %v1319_v58 = vmul.bf16 %v1386_v43, %v1316_v57  ;;  %v1729_v57 = vld [vmem:[%s2380_s5] sm:$0xf] }
 0x371   : > { %v1475_v41 = vmul.bf16 %v1470_v38, %v1438_v39  ;;  %v1283_v45 = vld [vmem:[#allocation4 + $0x8] sm:$0xf]  ;;  %v1372_v62 = vmul.bf16 %v1386_v43, %v1369_v59 }
 0x372   : > { %1429 = vrot.lane.b32.xlu1 %v1424_v37, %s2087_s18  ;;  %1668 = vrot.lane.b32.xlu0 %v1664_v36, %s2091_s22  ;;  %v1320_v48 = vmul.bf16 %v1315_v42, %v1283_v45  ;;  %v1334_v52 = vld [vmem:[#allocation4 + $0x8] sm:$0xf] }
 0x373   : > { %v1373_v54 = vmul.bf16 %v1368_v49, %v1334_v52 }
 0x376   : > { %1480 = vrot.lane.b32.xlu1 %v1475_v41, %s2088_s19  ;;  %1564 = vrot.lane.b32.xlu0 %v1560_v0, %s2093_s24 }
 0x37a   : > { %1325 = vrot.lane.b32.xlu1 %v1320_v48, %s2086_s17  ;;  %1427 = vrot.lane.b32.xlu0 %v1423_v47, %s2087_s18 }
 0x37e   : > { %1378 = vrot.lane.b32.xlu1 %v1373_v54, %s2089_s20  ;;  %1478 = vrot.lane.b32.xlu0 %v1474_v53, %s2088_s19 }
 0x382   : > { %1323 = vrot.lane.b32.xlu0 %v1319_v58, %s2086_s17  ;;  %v1788_v58 = vpop.f32.mrf.mxu1  ;;  %s2040_s17 = sshll.u32 %s2385_s28, 4 }
 0x384   : > { %v1790_v59 = vpop.f32.mrf.mxu1 }
 0x386   : > { %1376 = vrot.lane.b32.xlu0 %v1372_v62, %s2089_s20  ;;  %v1792_v62 = vpop.f32.mrf.mxu1  ;;  %s325_s20 = scalar_lea.vmem %s2383_s8, %s2040_s17 }
 0x388   : > { %v1793_v63 = vpop.f32.mrf.mxu1 }
 0x3dc   : > { %v1720_v50 = vpop.permute.xlu0 %1719 }
 0x3dd   : > { %v1723_v4 = vrot.slane %v1720_v50, 4 }
 0x3df   : > { %v1725_v6 = vsel %vm332_vm0, %v1723_v4, %v1724_v3 }
 0x3e0   : > { %v1726_v7 = vsel %vm623_vm11, %v1720_v50, %v1725_v6  ;;  %v1616_v8 = vpop.permute.xlu0 %1615 }
 0x3e1   : > { %v2032_v10 = vcombine.low %v1726_v7, %v1726_v7  ;;  %v2033_v11 = vcombine.high %v1726_v7, %v1726_v7  ;;  %v1619_v12 = vrot.slane %v1616_v8, 4 }
 0x3e3   : > { %2034 = vmatprep.subr.msk.bf16.mxu1 %vm332_vm0, %v2033_v11  ;;  %v1845_v55 = vsel %vm332_vm0, %v2032_v10, 0  ;;  %v1621_v16 = vsel %vm332_vm0, %v1619_v12, %v1620_v9 }
 0x3e4   : > { %v1430_v14 = vpop.permute.xlu1 %1429  ;;  %v1669_v15 = vpop.permute.xlu0 %1668  ;;  %1857 = vmatpush1.bf16.msra.mxu1 %v1845_v55  ;;  %v1622_v19 = vsel %vm764_vm12, %v1616_v8, %v1621_v16 }
 0x3e5   : > { %v1672_v17 = vrot.slane %v1669_v15, 4  ;;  %v1432_v33 = vrot.slane %v1430_v14, 4 }
 0x3e7   : > { %v1674_v18 = vsel %vm332_vm0, %v1672_v17, %v1673_v13 }
 0x3e8   : > { %v1675_v20 = vsel %vm695_vm10, %v1669_v15, %v1674_v18  ;;  %v1565_v21 = vpop.permute.xlu0 %1564  ;;  %v1481_v61 = vpop.permute.xlu1 %1480 }
 0x3e9   : > { %v2030_v22 = vcombine.low %v1622_v19, %v1675_v20  ;;  %v2031_v23 = vcombine.high %v1622_v19, %v1675_v20  ;;  %v1568_v24 = vrot.slane %v1565_v21, 4  ;;  %v1483_v36 = vrot.slane %v1481_v61, 4 }
 0x3eb   : > { %v1570_v27 = vsel %vm332_vm0, %v1568_v24, %v1569_v56  ;;  %1858 = vmatprep.subr.bf16.mxu1 %v2031_v23 }
 0x3ec   : > { %v1571_v28 = vsel %vm833_vm13, %v1565_v21, %v1570_v27  ;;  %v1428_v1 = vpop.permute.xlu0 %1427  ;;  %1859 = vmatpush1.bf16.msra.mxu1 %v2030_v22  ;;  %v1326_v34 = vpop.permute.xlu1 %1325 }
 0x3ed   : > { %v2028_v29 = vcombine.low %v1521_v25, %v1571_v28  ;;  %v2029_v31 = vcombine.high %v1521_v25, %v1571_v28  ;;  %v1431_v32 = vrot.slane %v1428_v1, 4  ;;  %v1328_v44 = vrot.slane %v1326_v34, 4 }
 0x3ef   : > { %1860 = vmatprep.subr.bf16.mxu1 %v2029_v31  ;;  %v1433_v37 = vsel %vm332_vm0, %v1431_v32, %v1432_v33 }
 0x3f0   : > { %v1479_v35 = vpop.permute.xlu0 %1478  ;;  %1861 = vmatpush1.bf16.msra.mxu1 %v2028_v29  ;;  %v1434_v26 = vsel %vm791_vm9, %v1428_v1, %v1433_v37  ;;  %v1379_v43 = vpop.permute.xlu1 %1378 }
 0x3f1   : > { %v1482_v38 = vrot.slane %v1479_v35, 4  ;;  %v1381_v46 = vrot.slane %v1379_v43, 4 }
 0x3f3   : > { %v1484_v60 = vsel %vm332_vm0, %v1482_v38, %v1483_v36 }
 0x3f4   : > { %v1485_v39 = vsel %vm860_vm8, %v1479_v35, %v1484_v60  ;;  %v1324_v40 = vpop.permute.xlu0 %1323 }
 0x3f5   : > { %v2026_v0 = vcombine.low %v1434_v26, %v1485_v39  ;;  %v2027_v41 = vcombine.high %v1434_v26, %v1485_v39  ;;  %v1327_v42 = vrot.slane %v1324_v40, 4 }
 0x3f7   : > { %1862 = vmatprep.subr.bf16.mxu1 %v2027_v41  ;;  %v1329_v47 = vsel %vm332_vm0, %v1327_v42, %v1328_v44 }
 0x3f8   : > { %v1377_v45 = vpop.permute.xlu0 %1376  ;;  %1863 = vmatpush1.bf16.msra.mxu1 %v2026_v0  ;;  %v1330_v51 = vsel %vm651_vm7, %v1324_v40, %v1329_v47 }
 0x3f9   : > { %v1380_v48 = vrot.slane %v1377_v45, 4 }
 0x3fb   : > { %v1382_v49 = vsel %vm332_vm0, %v1380_v48, %v1381_v46 }
 0x3fc   : > { %v1383_v52 = vsel %vm486_vm5, %v1377_v45, %v1382_v49 }
 0x3fd   : > { %v2024_v53 = vcombine.low %v1330_v51, %v1383_v52  ;;  %v2025_v54 = vcombine.high %v1330_v51, %v1383_v52 }
 0x3ff   : > { %1864 = vmatprep.subr.bf16.mxu1 %v2025_v54 }
 0x400   : > { %1865 = vmatpush1.bf16.msra.mxu1 %v2024_v53 }
 0x403   : > { %2035 = vmatmul.mubr.msk.bf16.vlgmr.msra.gmra.mxu1 %vm1840_vm1, %v1729_v57 }
 0x4c3   : > { %v1884_v30 = vpop.f32.mrf.mxu1 }
 0x4c4   : > { %v1885_v2 = vadd.f32 %v1884_v30, %v1788_v58 }
 0x4c5   : > { %v1886_v3 = vpop.f32.mrf.mxu1 }
 0x4c6   : > { %1891 = vst [vmem:[%s325_s20] sm:$0xff] %v1885_v2  ;;  %v1887_v50 = vadd.f32 %v1886_v3, %v1790_v59 }
 0x4c7   : > { %v1888_v4 = vpop.f32.mrf.mxu1 }
 0x4c8   : > { %1892 = vst [vmem:[%s325_s20 + $0x8] sm:$0xff] %v1887_v50 }
 0x4c9   : > { %v1889_v5 = vpop.f32.mrf.mxu1 }
 0x4ca PF: > { %s18_s27 = sadd.s32 1, %s2081_s27  }
 0x4cb   : > { %p15_p4 = scmp.ge.s32.totalorder %s18_s27, 4  }
 0x4cd   :  { %17 = sbr.rel (!%p15_p4) target bundleno = 1 (0x1), region = 85 }

</bundles_post_ra>
